<compile_context>
chip_gen: v5e
topology: v5e:2x2
jax: 0.10.0
libtpu: 0.0.40
codegen_flags: <defaults>
</compile_context>

<pallas_src>
import math

import jax
import jax.numpy as jnp
from jax import lax
from jax.experimental import pallas as pl
from jax.experimental.pallas import tpu as pltpu

_LANE = 128
_SUB_ROWS = 256  # rows per in-kernel sub-chunk (GELU <-> MXU overlap granularity)


def _gelu_f32(x):
    # Tanh-approximation GELU, exactly matching the reference PyTorch `gelu` (f32 math).
    return 0.5 * x * (1.0 + jnp.tanh(math.sqrt(2.0 / math.pi) * (x + 0.044715 * x * x * x)))


def _round_up(x, m):
    return ((x + m - 1) // m) * m


def _vmem_caps():
    """Per-generation VMEM capacity -> (capacity, planning budget, scoped limit)."""
    try:
        cap = int(pltpu.get_tpu_info().vmem_capacity_bytes)
    except Exception:
        cap = 64 * 1024 * 1024  # conservative fallback: v7x per-TensorCore VMEM
    budget = min(int(0.70 * cap), 88 * 1024 * 1024)
    limit = min(int(0.80 * cap), 100 * 1024 * 1024)
    return cap, budget, limit


def _cap_batch_tile(tb, batch, row_mult, target_steps=4):
    # Keep tb a power-of-two multiple of row_mult while (a) not padding the batch past the
    # tile and (b) giving the grid >= target_steps steps (v7x megacore sharding + x/out DMA
    # overlap) whenever the batch is large enough.
    b_r = _round_up(batch, row_mult)
    target = min(target_steps, pl.cdiv(b_r, row_mult))
    while tb > row_mult and (tb > b_r or pl.cdiv(b_r, tb) < target):
        tb //= 2
    return max(tb, row_mult)


# --------------------------------------------------------------------------------------
# Kernel bodies
# --------------------------------------------------------------------------------------

def _make_resident_kernel(sub_rows, n_sub):
    """Fused gelu->matmul1(+b1)->gelu->matmul2(+b2), processed in row sub-chunks so the
    GELU of chunk k+1 can co-issue with the MXU work of chunk k."""

    def kernel(x_ref, w1_ref, b1_ref, w2_ref, b2_ref, o_ref):
        def chunk(r0):
            x = x_ref[pl.ds(r0, sub_rows), :]
            h0 = _gelu_f32(x.astype(jnp.float32)).astype(w1_ref.dtype)
            a1 = jnp.dot(h0, w1_ref[...], preferred_element_type=jnp.float32)
            a1 = a1 + b1_ref[...]                     # b1 already f32
            h1 = _gelu_f32(a1).astype(w2_ref.dtype)
            a2 = jnp.dot(h1, w2_ref[...], preferred_element_type=jnp.float32)
            a2 = a2 + b2_ref[...]                     # b2 already f32
            o_ref[pl.ds(r0, sub_rows), :] = a2.astype(o_ref.dtype)

        if n_sub == 1:
            chunk(0)
        else:
            def body(c, carry):
                chunk(pl.multiple_of(c * sub_rows, sub_rows))
                return carry
            lax.fori_loop(0, n_sub, body, 0, unroll=2)

    return kernel


def _mtiled_kernel(x_ref, w1_ref, b1_ref, w2_ref, b2_ref, o_ref, h0_ref, acc_ref):
    """Large-H path: grid = (batch tiles, M tiles).  gelu(x) is computed once per batch tile
    (m == 0) into VMEM scratch; the second matmul accumulates over M chunks in f32."""
    m = pl.program_id(1)

    @pl.when(m == 0)
    def _():
        h0_ref[...] = _gelu_f32(x_ref[...].astype(jnp.float32)).astype(h0_ref.dtype)
        acc_ref[...] = jnp.zeros_like(acc_ref)

    a1 = jnp.dot(h0_ref[...], w1_ref[...], preferred_element_type=jnp.float32)
    a1 = a1 + b1_ref[...]                             # f32 bias chunk
    h1 = _gelu_f32(a1).astype(w2_ref.dtype)
    acc_ref[...] += jnp.dot(h1, w2_ref[...], preferred_element_type=jnp.float32)

    @pl.when(m == pl.num_programs(1) - 1)
    def _():
        o_ref[...] = (acc_ref[...] + b2_ref[...]).astype(o_ref.dtype)


# --------------------------------------------------------------------------------------
# Wrapper
# --------------------------------------------------------------------------------------

def classifier_one(x, w1, b1, w2, b2, *, batch_tile=None, sub_rows=None,
                   m_tile=None, force_m_tiling=False):
    """x: [B, H]; w1: [H, H//2]; b1: [1, H//2]; w2: [H//2, L]; b2: [1, L] -> [B, L].

    batch_tile / sub_rows / m_tile / force_m_tiling are tuning & testing overrides.
    """
    B, H = x.shape
    M = w1.shape[1]
    L = w2.shape[1]
    itemsize = jnp.dtype(x.dtype).itemsize
    cap, budget, vmem_limit = _vmem_caps()

    # One-time f32 bias cast (kernel accumulates in f32; avoids per-grid-step astype).
    b1f = b1.astype(jnp.float32)
    b2f = b2.astype(jnp.float32)

    # Lane-dense output: zero-pad the label dim up to a multiple of 128.
    Lp = _round_up(L, _LANE)
    if Lp != L:
        w2 = jnp.pad(w2, ((0, 0), (0, Lp - L)))
        b2f = jnp.pad(b2f, ((0, 0), (0, Lp - L)))

    row_mult = 16 if x.dtype == jnp.bfloat16 else 8

    # Single-buffered resident footprint (weights in native dtype, biases in f32).
    weight_bytes = (H * M + M * Lp) * itemsize + 4 * (M + Lp)
    # 0.45*cap keeps headroom even if the single-buffer request is ignored by the pipeline.
    resident_ok = (not force_m_tiling) and weight_bytes <= int(0.45 * cap)

    cost = pl.CostEstimate(
        flops=int(2 * B * (H * M + M * Lp)),
        transcendentals=int(B * (H + M)),
        bytes_accessed=int((B * H + H * M + M * Lp + B * Lp) * itemsize + 4 * (M + Lp)),
    )

    if resident_ok:
        # ---------------- resident-weight path ----------------
        if batch_tile is not None:
            tb = batch_tile
        else:
            tb = row_mult
            for cand in (2048, 1024, 512, 256, 128, 64, 32, 16, 8):
                if cand % row_mult:
                    continue
                if weight_bytes + 2 * cand * (H + Lp) * itemsize <= budget:
                    tb = cand
                    break
            tb = _cap_batch_tile(tb, B, row_mult)

        Bp = _round_up(B, tb)
        xp = jnp.pad(x, ((0, Bp - B), (0, 0))) if Bp != B else x

        sub = sub_rows if sub_rows is not None else max(row_mult, min(tb, _SUB_ROWS))
        n_sub, rem = divmod(tb, sub)
        if rem:
            sub, n_sub = tb, 1

        kernel = _make_resident_kernel(sub, n_sub)

        def _resident_call(single_buffer):
            w_kw = {"pipeline_mode": pl.Buffered(1)} if single_buffer else {}
            grid_spec = pltpu.PrefetchScalarGridSpec(
                num_scalar_prefetch=0,
                grid=(Bp // tb,),
                in_specs=[
                    pl.BlockSpec((tb, H), lambda i: (i, 0)),            # x: streamed
                    pl.BlockSpec((H, M), lambda i: (0, 0), **w_kw),     # w1: resident
                    pl.BlockSpec((1, M), lambda i: (0, 0), **w_kw),     # b1 (f32): resident
                    pl.BlockSpec((M, Lp), lambda i: (0, 0), **w_kw),    # w2: resident
                    pl.BlockSpec((1, Lp), lambda i: (0, 0), **w_kw),    # b2 (f32): resident
                ],
                out_specs=pl.BlockSpec((tb, Lp), lambda i: (i, 0)),
            )
            return pl.pallas_call(
                kernel,
                out_shape=jax.ShapeDtypeStruct((Bp, Lp), x.dtype),
                grid_spec=grid_spec,
                compiler_params=pltpu.CompilerParams(
                    dimension_semantics=("parallel",),
                    vmem_limit_bytes=vmem_limit,
                ),
                cost_estimate=cost,
            )(xp, w1, b1f, w2, b2f)

        try:
            # Preferred: single-buffered resident operands (halves their VMEM footprint).
            out = jax.block_until_ready(_resident_call(True))
        except Exception:
            # pl.Buffered(1) rejected by this pallas_call lowering -> default buffering.
            out = _resident_call(False)

    else:
        # ---------------- M-tiled streaming path (large H) ----------------
        if m_tile is not None:
            tM = m_tile
        else:
            tM = 128
            for cand in (1024, 512, 256, 128):
                if 2 * cand * (H + Lp) * itemsize <= budget // 2:
                    tM = cand
                    break
            tM = min(tM, _round_up(M, _LANE))
        Mp = _round_up(M, tM)

        w1p = jnp.pad(w1, ((0, 0), (0, Mp - M))) if Mp != M else w1
        b1p = jnp.pad(b1f, ((0, 0), (0, Mp - M))) if Mp != M else b1f
        w2p = jnp.pad(w2, ((0, Mp - M), (0, 0))) if Mp != M else w2

        if batch_tile is not None:
            tb = batch_tile
        else:
            per_step_w = 2 * tM * (H + Lp) * itemsize + 8 * tM + 8 * Lp
            remaining = max(budget - per_step_w, 0)
            tb = row_mult
            for cand in (1024, 512, 256, 128, 64, 32, 16, 8):
                if cand % row_mult:
                    continue
                # x/out double-buffered tiles + gelu(x) scratch + f32 accumulator scratch
                need = cand * (3 * H + 2 * Lp) * itemsize + 4 * cand * Lp
                if need <= remaining:
                    tb = cand
                    break
            tb = _cap_batch_tile(tb, B, row_mult)

        Bp = _round_up(B, tb)
        xp = jnp.pad(x, ((0, Bp - B), (0, 0))) if Bp != B else x

        grid_spec = pltpu.PrefetchScalarGridSpec(
            num_scalar_prefetch=0,
            grid=(Bp // tb, Mp // tM),
            in_specs=[
                pl.BlockSpec((tb, H), lambda i, m: (i, 0)),    # x: per batch tile
                pl.BlockSpec((H, tM), lambda i, m: (0, m)),    # w1 column chunk
                pl.BlockSpec((1, tM), lambda i, m: (0, m)),    # b1 chunk (f32)
                pl.BlockSpec((tM, Lp), lambda i, m: (m, 0)),   # w2 row chunk
                pl.BlockSpec((1, Lp), lambda i, m: (0, 0)),    # b2 (f32)
            ],
            out_specs=pl.BlockSpec((tb, Lp), lambda i, m: (i, 0)),
            scratch_shapes=[
                pltpu.VMEM((tb, H), w1.dtype),     # gelu(x), computed once per batch tile
                pltpu.VMEM((tb, Lp), jnp.float32),  # f32 accumulator over M chunks
            ],
        )
        out = pl.pallas_call(
            _mtiled_kernel,
            out_shape=jax.ShapeDtypeStruct((Bp, Lp), x.dtype),
            grid_spec=grid_spec,
            compiler_params=pltpu.CompilerParams(
                dimension_semantics=("parallel", "arbitrary"),
                vmem_limit_bytes=vmem_limit,
            ),
            cost_estimate=cost,
        )(xp, w1p, b1p, w2p, b2f)

    return out[:B, :L]


# --------------------------------------------------------------------------------------
# Reference + init
# --------------------------------------------------------------------------------------

def init_params(key, hidden_size, num_labels, dtype=jnp.float32):
    """Deterministic init mimicking nn.Linear's uniform(-1/sqrt(fan_in), 1/sqrt(fan_in))."""
    middle_dim = hidden_size // 2
    k1, k2, k3, k4 = jax.random.split(key, 4)
    bound1 = 1.0 / math.sqrt(hidden_size)
    bound2 = 1.0 / math.sqrt(middle_dim)
    w1 = jax.random.uniform(k1, (hidden_size, middle_dim), dtype, -bound1, bound1)
    b1 = jax.random.uniform(k2, (1, middle_dim), dtype, -bound1, bound1)
    w2 = jax.random.uniform(k3, (middle_dim, num_labels), dtype, -bound2, bound2)
    b2 = jax.random.uniform(k4, (1, num_labels), dtype, -bound2, bound2)
    return w1, b1, w2, b2


def reference(x, w1, b1, w2, b2):
    h = _gelu_f32(x.astype(jnp.float32))
    h = h @ w1.astype(jnp.float32) + b1.astype(jnp.float32)
    h = _gelu_f32(h)
    return (h @ w2.astype(jnp.float32) + b2.astype(jnp.float32)).astype(x.dtype)


if __name__ == "__main__":
    root = jax.random.PRNGKey(0)
    kx1, kp1, kx2, kx3, kp3 = jax.random.split(root, 5)

    # --- primary test: small shapes, resident path, single batch tile ---
    batch, hidden_size, num_labels = 8, 32, 4
    x = jax.random.normal(kx1, (batch, hidden_size), dtype=jnp.float32)
    w1, b1, w2, b2 = init_params(kp1, hidden_size, num_labels)
    out = jax.block_until_ready(classifier_one(x, w1, b1, w2, b2))
    ref = reference(x, w1, b1, w2, b2)
    assert out.shape == (batch, num_labels), out.shape
    assert jnp.allclose(out, ref, atol=1e-5, rtol=1e-5), "resident path mismatch"

    # --- resident path with multiple grid steps + in-kernel sub-chunking ---
    x2 = jax.random.normal(kx2, (64, hidden_size), dtype=jnp.float32)
    out2 = jax.block_until_ready(
        classifier_one(x2, w1, b1, w2, b2, batch_tile=32, sub_rows=8))
    ref2 = reference(x2, w1, b1, w2, b2)
    assert jnp.allclose(out2, ref2, atol=1e-5, rtol=1e-5), "sub-chunked path mismatch"

    # --- M-tiled streaming fallback (large-H path), forced at small shapes ---
    B3, H3, L3 = 48, 512, 4
    x3 = jax.random.normal(kx3, (B3, H3), dtype=jnp.float32)
    p3 = init_params(kp3, H3, L3)
    out3 = jax.block_until_ready(
        classifier_one(x3, *p3, force_m_tiling=True, m_tile=128, batch_tile=16))
    ref3 = reference(x3, *p3)
    assert out3.shape == (B3, L3), out3.shape
    assert jnp.allclose(out3, ref3, atol=1e-4, rtol=1e-4), "M-tiled path mismatch"

    print("KERNEL_OK")
</pallas_src>

<mosaic_0001>
module attributes {stable_mosaic.version = 11 : i64} {
  func.func @kernel(%arg0: i32, %arg1: memref<8x32xf32, #tpu.memory_space<vmem>>, %arg2: memref<32x16xf32, #tpu.memory_space<vmem>>, %arg3: memref<1x16xf32, #tpu.memory_space<vmem>>, %arg4: memref<16x128xf32, #tpu.memory_space<vmem>>, %arg5: memref<1x128xf32, #tpu.memory_space<vmem>>, %arg6: memref<8x128xf32, #tpu.memory_space<vmem>>) attributes {dimension_semantics = [#tpu.dimension_semantics<parallel>], iteration_bounds = array<i64: 1>, scalar_prefetch = 0 : i64, scratch_operands = 0 : i64, tpu.core_type = #tpu.core_type<tc>, window_params = [{transform_indices = @transform_0, window_bounds = array<i64: 8, 32>}, {pipeline_mode = #tpu.pipeline_mode<synchronous>, transform_indices = @transform_1, window_bounds = array<i64: 32, 16>}, {pipeline_mode = #tpu.pipeline_mode<synchronous>, transform_indices = @transform_2, window_bounds = array<i64: 1, 16>}, {pipeline_mode = #tpu.pipeline_mode<synchronous>, transform_indices = @transform_3, window_bounds = array<i64: 16, 128>}, {pipeline_mode = #tpu.pipeline_mode<synchronous>, transform_indices = @transform_4, window_bounds = array<i64: 1, 128>}, {transform_indices = @transform_5, window_bounds = array<i64: 8, 128>}]} {
    %c0 = arith.constant 0 : index
    %c0_0 = arith.constant 0 : index
    %0 = vector.load %arg1[%c0, %c0_0] : memref<8x32xf32, #tpu.memory_space<vmem>>, vector<8x32xf32>
    %cst = arith.constant 5.000000e-01 : f32
    %1 = vector.broadcast %cst : f32 to vector<8x32xf32>
    %2 = arith.mulf %1, %0 : vector<8x32xf32>
    %cst_1 = arith.constant 4.471500e-02 : f32
    %3 = vector.broadcast %cst_1 : f32 to vector<8x32xf32>
    %4 = arith.mulf %3, %0 : vector<8x32xf32>
    %5 = arith.mulf %4, %0 : vector<8x32xf32>
    %6 = arith.mulf %5, %0 : vector<8x32xf32>
    %7 = arith.addf %0, %6 : vector<8x32xf32>
    %cst_2 = arith.constant 0.797884583 : f32
    %8 = vector.broadcast %cst_2 : f32 to vector<8x32xf32>
    %9 = arith.mulf %8, %7 : vector<8x32xf32>
    %10 = math.tanh %9 : vector<8x32xf32>
    %cst_3 = arith.constant 1.000000e+00 : f32
    %11 = vector.broadcast %cst_3 : f32 to vector<8x32xf32>
    %12 = arith.addf %11, %10 : vector<8x32xf32>
    %13 = arith.mulf %2, %12 : vector<8x32xf32>
    %c0_4 = arith.constant 0 : index
    %c0_5 = arith.constant 0 : index
    %14 = vector.load %arg2[%c0_4, %c0_5] : memref<32x16xf32, #tpu.memory_space<vmem>>, vector<32x16xf32>
    %cst_6 = arith.constant dense<0.000000e+00> : vector<8x16xf32>
    %15 = tpu.matmul %13, %14, %cst_6 {dimension_numbers = #tpu.dot_dimension_numbers<[1], [0], [0], [1], [0, 0, 1, 1], [], []>} : vector<8x32xf32>, vector<32x16xf32>, vector<8x16xf32> -> vector<8x16xf32>
    %c0_7 = arith.constant 0 : index
    %c0_8 = arith.constant 0 : index
    %16 = vector.load %arg3[%c0_7, %c0_8] : memref<1x16xf32, #tpu.memory_space<vmem>>, vector<1x16xf32>
    %17 = vector.broadcast %16 : vector<1x16xf32> to vector<8x16xf32>
    %18 = arith.addf %15, %17 : vector<8x16xf32>
    %cst_9 = arith.constant 5.000000e-01 : f32
    %19 = vector.broadcast %cst_9 : f32 to vector<8x16xf32>
    %20 = arith.mulf %19, %18 : vector<8x16xf32>
    %cst_10 = arith.constant 4.471500e-02 : f32
    %21 = vector.broadcast %cst_10 : f32 to vector<8x16xf32>
    %22 = arith.mulf %21, %18 : vector<8x16xf32>
    %23 = arith.mulf %22, %18 : vector<8x16xf32>
    %24 = arith.mulf %23, %18 : vector<8x16xf32>
    %25 = arith.addf %18, %24 : vector<8x16xf32>
    %cst_11 = arith.constant 0.797884583 : f32
    %26 = vector.broadcast %cst_11 : f32 to vector<8x16xf32>
    %27 = arith.mulf %26, %25 : vector<8x16xf32>
    %28 = math.tanh %27 : vector<8x16xf32>
    %cst_12 = arith.constant 1.000000e+00 : f32
    %29 = vector.broadcast %cst_12 : f32 to vector<8x16xf32>
    %30 = arith.addf %29, %28 : vector<8x16xf32>
    %31 = arith.mulf %20, %30 : vector<8x16xf32>
    %c0_13 = arith.constant 0 : index
    %c0_14 = arith.constant 0 : index
    %32 = vector.load %arg4[%c0_13, %c0_14] : memref<16x128xf32, #tpu.memory_space<vmem>>, vector<16x128xf32>
    %cst_15 = arith.constant dense<0.000000e+00> : vector<8x128xf32>
    %33 = tpu.matmul %31, %32, %cst_15 {dimension_numbers = #tpu.dot_dimension_numbers<[1], [0], [0], [1], [0, 0, 1, 1], [], []>} : vector<8x16xf32>, vector<16x128xf32>, vector<8x128xf32> -> vector<8x128xf32>
    %c0_16 = arith.constant 0 : index
    %c0_17 = arith.constant 0 : index
    %34 = vector.load %arg5[%c0_16, %c0_17] : memref<1x128xf32, #tpu.memory_space<vmem>>, vector<1x128xf32>
    %35 = vector.broadcast %34 : vector<1x128xf32> to vector<8x128xf32>
    %36 = arith.addf %33, %35 : vector<8x128xf32>
    %c0_18 = arith.constant 0 : index
    %c0_19 = arith.constant 0 : index
    %37 = vector.load %arg6[%c0_18, %c0_19] : memref<8x128xf32, #tpu.memory_space<vmem>>, vector<8x128xf32>
    tpu.vector_store %arg6[%c0_18, %c0_19], %36 {strides = array<i32>} : memref<8x128xf32, #tpu.memory_space<vmem>>, vector<8x128xf32>,
    return
  }
  func.func @transform_0(%arg0: i32) -> (i32, i32) {
    %c0_i32 = arith.constant 0 : i32
    %c0_i32_0 = arith.constant 0 : i32
    return %arg0, %c0_i32 : i32, i32
  }
  func.func @transform_1(%arg0: i32) -> (i32, i32) {
    %c0_i32 = arith.constant 0 : i32
    %c0_i32_0 = arith.constant 0 : i32
    %c0_i32_1 = arith.constant 0 : i32
    return %c0_i32, %c0_i32_0 : i32, i32
  }
  func.func @transform_2(%arg0: i32) -> (i32, i32) {
    %c0_i32 = arith.constant 0 : i32
    %c0_i32_0 = arith.constant 0 : i32
    %c0_i32_1 = arith.constant 0 : i32
    return %c0_i32, %c0_i32_0 : i32, i32
  }
  func.func @transform_3(%arg0: i32) -> (i32, i32) {
    %c0_i32 = arith.constant 0 : i32
    %c0_i32_0 = arith.constant 0 : i32
    %c0_i32_1 = arith.constant 0 : i32
    return %c0_i32, %c0_i32_0 : i32, i32
  }
  func.func @transform_4(%arg0: i32) -> (i32, i32) {
    %c0_i32 = arith.constant 0 : i32
    %c0_i32_0 = arith.constant 0 : i32
    %c0_i32_1 = arith.constant 0 : i32
    return %c0_i32, %c0_i32_0 : i32, i32
  }
  func.func @transform_5(%arg0: i32) -> (i32, i32) {
    %c0_i32 = arith.constant 0 : i32
    %c0_i32_0 = arith.constant 0 : i32
    return %arg0, %c0_i32 : i32, i32
  }
}

module attributes {stable_mosaic.version = 11 : i64} {
  func.func @kernel(%arg0: i32, %arg1: memref<8x32xf32, #tpu.memory_space<vmem>>, %arg2: memref<32x16xf32, #tpu.memory_space<vmem>>, %arg3: memref<1x16xf32, #tpu.memory_space<vmem>>, %arg4: memref<16x128xf32, #tpu.memory_space<vmem>>, %arg5: memref<1x128xf32, #tpu.memory_space<vmem>>, %arg6: memref<8x128xf32, #tpu.memory_space<vmem>>) attributes {dimension_semantics = [#tpu.dimension_semantics<parallel>], iteration_bounds = array<i64: 1>, scalar_prefetch = 0 : i64, scratch_operands = 0 : i64, tpu.core_type = #tpu.core_type<tc>, window_params = [{transform_indices = @transform_0, window_bounds = array<i64: 8, 32>}, {pipeline_mode = #tpu.pipeline_mode<synchronous>, transform_indices = @transform_1, window_bounds = array<i64: 32, 16>}, {pipeline_mode = #tpu.pipeline_mode<synchronous>, transform_indices = @transform_2, window_bounds = array<i64: 1, 16>}, {pipeline_mode = #tpu.pipeline_mode<synchronous>, transform_indices = @transform_3, window_bounds = array<i64: 16, 128>}, {pipeline_mode = #tpu.pipeline_mode<synchronous>, transform_indices = @transform_4, window_bounds = array<i64: 1, 128>}, {transform_indices = @transform_5, window_bounds = array<i64: 8, 128>}]} {
    %c0 = arith.constant 0 : index
    %c0_0 = arith.constant 0 : index
    %0 = vector.load %arg1[%c0, %c0_0] : memref<8x32xf32, #tpu.memory_space<vmem>>, vector<8x32xf32>
    %cst = arith.constant 5.000000e-01 : f32
    %1 = vector.broadcast %cst : f32 to vector<8x32xf32>
    %2 = arith.mulf %1, %0 : vector<8x32xf32>
    %cst_1 = arith.constant 4.471500e-02 : f32
    %3 = vector.broadcast %cst_1 : f32 to vector<8x32xf32>
    %4 = arith.mulf %3, %0 : vector<8x32xf32>
    %5 = arith.mulf %4, %0 : vector<8x32xf32>
    %6 = arith.mulf %5, %0 : vector<8x32xf32>
    %7 = arith.addf %0, %6 : vector<8x32xf32>
    %cst_2 = arith.constant 0.797884583 : f32
    %8 = vector.broadcast %cst_2 : f32 to vector<8x32xf32>
    %9 = arith.mulf %8, %7 : vector<8x32xf32>
    %10 = math.tanh %9 : vector<8x32xf32>
    %cst_3 = arith.constant 1.000000e+00 : f32
    %11 = vector.broadcast %cst_3 : f32 to vector<8x32xf32>
    %12 = arith.addf %11, %10 : vector<8x32xf32>
    %13 = arith.mulf %2, %12 : vector<8x32xf32>
    %c0_4 = arith.constant 0 : index
    %c0_5 = arith.constant 0 : index
    %14 = vector.load %arg2[%c0_4, %c0_5] : memref<32x16xf32, #tpu.memory_space<vmem>>, vector<32x16xf32>
    %cst_6 = arith.constant dense<0.000000e+00> : vector<8x16xf32>
    %15 = tpu.matmul %13, %14, %cst_6 {dimension_numbers = #tpu.dot_dimension_numbers<[1], [0], [0], [1], [0, 0, 1, 1], [], []>} : vector<8x32xf32>, vector<32x16xf32>, vector<8x16xf32> -> vector<8x16xf32>
    %c0_7 = arith.constant 0 : index
    %c0_8 = arith.constant 0 : index
    %16 = vector.load %arg3[%c0_7, %c0_8] : memref<1x16xf32, #tpu.memory_space<vmem>>, vector<1x16xf32>
    %17 = vector.broadcast %16 : vector<1x16xf32> to vector<8x16xf32>
    %18 = arith.addf %15, %17 : vector<8x16xf32>
    %cst_9 = arith.constant 5.000000e-01 : f32
    %19 = vector.broadcast %cst_9 : f32 to vector<8x16xf32>
    %20 = arith.mulf %19, %18 : vector<8x16xf32>
    %cst_10 = arith.constant 4.471500e-02 : f32
    %21 = vector.broadcast %cst_10 : f32 to vector<8x16xf32>
    %22 = arith.mulf %21, %18 : vector<8x16xf32>
    %23 = arith.mulf %22, %18 : vector<8x16xf32>
    %24 = arith.mulf %23, %18 : vector<8x16xf32>
    %25 = arith.addf %18, %24 : vector<8x16xf32>
    %cst_11 = arith.constant 0.797884583 : f32
    %26 = vector.broadcast %cst_11 : f32 to vector<8x16xf32>
    %27 = arith.mulf %26, %25 : vector<8x16xf32>
    %28 = math.tanh %27 : vector<8x16xf32>
    %cst_12 = arith.constant 1.000000e+00 : f32
    %29 = vector.broadcast %cst_12 : f32 to vector<8x16xf32>
    %30 = arith.addf %29, %28 : vector<8x16xf32>
    %31 = arith.mulf %20, %30 : vector<8x16xf32>
    %c0_13 = arith.constant 0 : index
    %c0_14 = arith.constant 0 : index
    %32 = vector.load %arg4[%c0_13, %c0_14] : memref<16x128xf32, #tpu.memory_space<vmem>>, vector<16x128xf32>
    %cst_15 = arith.constant dense<0.000000e+00> : vector<8x128xf32>
    %33 = tpu.matmul %31, %32, %cst_15 {dimension_numbers = #tpu.dot_dimension_numbers<[1], [0], [0], [1], [0, 0, 1, 1], [], []>} : vector<8x16xf32>, vector<16x128xf32>, vector<8x128xf32> -> vector<8x128xf32>
    %c0_16 = arith.constant 0 : index
    %c0_17 = arith.constant 0 : index
    %34 = vector.load %arg5[%c0_16, %c0_17] : memref<1x128xf32, #tpu.memory_space<vmem>>, vector<1x128xf32>
    %35 = vector.broadcast %34 : vector<1x128xf32> to vector<8x128xf32>
    %36 = arith.addf %33, %35 : vector<8x128xf32>
    %c0_18 = arith.constant 0 : index
    %c0_19 = arith.constant 0 : index
    %37 = vector.load %arg6[%c0_18, %c0_19] : memref<8x128xf32, #tpu.memory_space<vmem>>, vector<8x128xf32>
    tpu.vector_store %arg6[%c0_18, %c0_19], %36 {strides = array<i32>} : memref<8x128xf32, #tpu.memory_space<vmem>>, vector<8x128xf32>,
    return
  }
  func.func @transform_0(%arg0: i32) -> (i32, i32) {
    %c0_i32 = arith.constant 0 : i32
    %c0_i32_0 = arith.constant 0 : i32
    return %arg0, %c0_i32 : i32, i32
  }
  func.func @transform_1(%arg0: i32) -> (i32, i32) {
    %c0_i32 = arith.constant 0 : i32
    %c0_i32_0 = arith.constant 0 : i32
    %c0_i32_1 = arith.constant 0 : i32
    return %c0_i32, %c0_i32_0 : i32, i32
  }
  func.func @transform_2(%arg0: i32) -> (i32, i32) {
    %c0_i32 = arith.constant 0 : i32
    %c0_i32_0 = arith.constant 0 : i32
    %c0_i32_1 = arith.constant 0 : i32
    return %c0_i32, %c0_i32_0 : i32, i32
  }
  func.func @transform_3(%arg0: i32) -> (i32, i32) {
    %c0_i32 = arith.constant 0 : i32
    %c0_i32_0 = arith.constant 0 : i32
    %c0_i32_1 = arith.constant 0 : i32
    return %c0_i32, %c0_i32_0 : i32, i32
  }
  func.func @transform_4(%arg0: i32) -> (i32, i32) {
    %c0_i32 = arith.constant 0 : i32
    %c0_i32_0 = arith.constant 0 : i32
    %c0_i32_1 = arith.constant 0 : i32
    return %c0_i32, %c0_i32_0 : i32, i32
  }
  func.func @transform_5(%arg0: i32) -> (i32, i32) {
    %c0_i32 = arith.constant 0 : i32
    %c0_i32_0 = arith.constant 0 : i32
    return %arg0, %c0_i32 : i32, i32
  }
}

</mosaic_0001>

<bundles_post_ra>
// kernel: tpu_custom_call.1
= control target key start
LH: loop header
LB: loop body
LE: loop exit
PB: predicated region body
PF: predicated region fallthrough
CT: control target
= control target key end

     0   :  { %s215_s0 = inlined_call_operand.vmem [shape: f32[8,32], index: 0, kind: input, shape index: {}]   ;;  %s216_s1 = inlined_call_operand.vmem [shape: f32[32,16], index: 1, kind: input, shape index: {}]   ;;  %s217_s2 = inlined_call_operand.vmem [shape: f32[1,16], index: 2, kind: input, shape index: {}]   ;;  %s218_s3 = inlined_call_operand.vmem [shape: f32[16,128], index: 3, kind: input, shape index: {}]   ;;  %s219_s4 = inlined_call_operand.vmem [shape: f32[1,128], index: 4, kind: input, shape index: {}]   ;;  %s220_s5 = inlined_call_operand.hbm [shape: f32[8,128], index: 5, kind: output, shape index: {}]  }
   0x1   :  { %v34_v0 = vld [vmem:[%s216_s1 + $0x18] sm:$0xff]  ;;  %v33_v1 = vld [vmem:[%s216_s1 + $0x10] sm:$0xff]  ;;  %v21_v2 = vld [vmem:[%s215_s0] sm:$0xff] }
   0x2   :  { %55 = vmatpush.msra.mxu0 %v34_v0  ;;  %v32_v3 = vld [vmem:[%s216_s1 + $0x8] sm:$0xff]  ;;  %v23_v4 = vmul.f32 0.044715, %v21_v2 }
   0x4   :  { %56 = vmatpush.msra.mxu0 %v33_v1 }
   0x5   :  { %10 = vsyncpa [#allocation3], 0  ;;  %v31_v5 = vld [vmem:[%s216_s1] sm:$0xff]  ;;  %v24_v6 = vmul.f32 %v23_v4, %v21_v2  ;;  %v22_v10 = vmul.f32 0.5, %v21_v2  ;;  %vm39_vm0 = vcmask 261120   ;;  %v73_v14 = vld [vmem:[%s218_s3 + $0x8] sm:$0xff] }
   0x6   :  { %57 = vmatpush.msra.mxu0 %v32_v3  ;;  %v72_v15 = vld [vmem:[%s218_s3] sm:$0xff]  ;;  %96 = vmatpush.msra.mxu1 %v73_v14  ;;  %vm78_vm1 = vcmask 130048   ;;  %s154_s8 = smov [#allocation2]   ;;  %s110_s11 = sshll.u32 %s220_s5, 4  ;;  %s111_s11 = int_to_ptr.hbm [resolvable:$true] %s110_s11 }
   0x7   :  { %v25_v7 = vmul.f32 %v24_v6, %v21_v2  ;;  %v122_v16 = vld [vmem:[%s217_s2] ss:$0 sm:$0xff]  ;;  %s108_s2 = sshll.u32 %s154_s8, 4  ;;  %s109_s2 = int_to_ptr.vmem [resolvable:$true] %s108_s2 }
   0x8   :  { %58 = vmatpush.msra.mxu0 %v31_v5  ;;  %97 = vmatpush.msra.mxu1 %v72_v15  ;;  %v123_v28 = vld [vmem:[%s219_s4] ss:$0 sm:$0xff] }
   0x9   :  { %v26_v8 = vadd.f32 %v25_v7, %v21_v2 }
   0xb   :  { %v27_v9 = vmul.f32 0.7978846, %v26_v8 }
   0xd   :  { %124 = vtanh.f32 %v27_v9 }
  0x13   :  { %v125_v11 = vpop.eup %124 }
  0x14   :  { %v29_v12 = vadd.f32 1.0, %v125_v11 }
  0x16   :  { %v30_v13 = vmul.f32 %v29_v12, %v22_v10 }
  0x18   :  { %119 = vmatmul.msk.f32.vlgmr.msra.gmra.mxu0 %vm39_vm0, %v30_v13 }
  0x95   :  { %v60_v17 = vpop.f32.mrf.mxu0 }
  0x96   :  { %v61_v18 = vadd.f32 %v122_v16, %v60_v17 }
  0x98   :  { %v64_v19 = vmul.f32 0.044715, %v61_v18  ;;  %v63_v25 = vmul.f32 0.5, %v61_v18 }
  0x9a   :  { %v65_v20 = vmul.f32 %v64_v19, %v61_v18 }
  0x9c   :  { %v66_v21 = vmul.f32 %v65_v20, %v61_v18 }
  0x9e   :  { %v67_v22 = vadd.f32 %v66_v21, %v61_v18 }
  0xa0   :  { %v68_v23 = vmul.f32 0.7978846, %v67_v22 }
  0xa2   :  { %126 = vtanh.f32 %v68_v23 }
  0xa8   :  { %v127_v24 = vpop.eup %126 }
  0xa9   :  { %v70_v26 = vadd.f32 1.0, %v127_v24 }
  0xab   :  { %v71_v27 = vmul.f32 %v70_v26, %v63_v25 }
  0xad   :  { %120 = vmatmul.msk.f32.vlgmr.msra.gmra.mxu1 %vm78_vm1, %v71_v27 }
 0x12a   :  { %v99_v29 = vpop.f32.mrf.mxu1 }
 0x12b   :  { %v100_v30 = vadd.f32 %v123_v28, %v99_v29 }
 0x12d   :  { %102 = vst [vmem:[#allocation2] sm:$0xff] %v100_v30 }
 0x12e   :  { %113 = dma.vmem_to_hbm [thread:$0]  %s109_s2, 128, %s111_s11, [#allocation3]  }
 0x12f   :  { %152 = dma.done.wait [#allocation3], 128  }
 0x130   :  { %153 = vsyncadd [#allocation3], 4294967168 }
 0x131   :  { %118 = vsyncpa [#allocation3], 1 }

// kernel: tpu_custom_call.1
= control target key start
LH: loop header
LB: loop body
LE: loop exit
PB: predicated region body
PF: predicated region fallthrough
CT: control target
= control target key end

     0   :  { %s215_s0 = inlined_call_operand.vmem [shape: f32[8,32], index: 0, kind: input, shape index: {}]   ;;  %s216_s1 = inlined_call_operand.vmem [shape: f32[32,16], index: 1, kind: input, shape index: {}]   ;;  %s217_s2 = inlined_call_operand.vmem [shape: f32[1,16], index: 2, kind: input, shape index: {}]   ;;  %s218_s3 = inlined_call_operand.vmem [shape: f32[16,128], index: 3, kind: input, shape index: {}]   ;;  %s219_s4 = inlined_call_operand.vmem [shape: f32[1,128], index: 4, kind: input, shape index: {}]   ;;  %s220_s5 = inlined_call_operand.hbm [shape: f32[8,128], index: 5, kind: output, shape index: {}]  }
   0x1   :  { %v34_v0 = vld [vmem:[%s216_s1 + $0x18] sm:$0xff]  ;;  %v33_v1 = vld [vmem:[%s216_s1 + $0x10] sm:$0xff]  ;;  %v21_v2 = vld [vmem:[%s215_s0] sm:$0xff] }
   0x2   :  { %55 = vmatpush.msra.mxu0 %v34_v0  ;;  %v32_v3 = vld [vmem:[%s216_s1 + $0x8] sm:$0xff]  ;;  %v23_v4 = vmul.f32 0.044715, %v21_v2 }
   0x4   :  { %56 = vmatpush.msra.mxu0 %v33_v1 }
   0x5   :  { %10 = vsyncpa [#allocation3], 0  ;;  %v31_v5 = vld [vmem:[%s216_s1] sm:$0xff]  ;;  %v24_v6 = vmul.f32 %v23_v4, %v21_v2  ;;  %v22_v10 = vmul.f32 0.5, %v21_v2  ;;  %vm39_vm0 = vcmask 261120   ;;  %v73_v14 = vld [vmem:[%s218_s3 + $0x8] sm:$0xff] }
   0x6   :  { %57 = vmatpush.msra.mxu0 %v32_v3  ;;  %v72_v15 = vld [vmem:[%s218_s3] sm:$0xff]  ;;  %96 = vmatpush.msra.mxu1 %v73_v14  ;;  %vm78_vm1 = vcmask 130048   ;;  %s154_s8 = smov [#allocation2]   ;;  %s110_s11 = sshll.u32 %s220_s5, 4  ;;  %s111_s11 = int_to_ptr.hbm [resolvable:$true] %s110_s11 }
   0x7   :  { %v25_v7 = vmul.f32 %v24_v6, %v21_v2  ;;  %v122_v16 = vld [vmem:[%s217_s2] ss:$0 sm:$0xff]  ;;  %s108_s2 = sshll.u32 %s154_s8, 4  ;;  %s109_s2 = int_to_ptr.vmem [resolvable:$true] %s108_s2 }
   0x8   :  { %58 = vmatpush.msra.mxu0 %v31_v5  ;;  %97 = vmatpush.msra.mxu1 %v72_v15  ;;  %v123_v28 = vld [vmem:[%s219_s4] ss:$0 sm:$0xff] }
   0x9   :  { %v26_v8 = vadd.f32 %v25_v7, %v21_v2 }
   0xb   :  { %v27_v9 = vmul.f32 0.7978846, %v26_v8 }
   0xd   :  { %124 = vtanh.f32 %v27_v9 }
  0x13   :  { %v125_v11 = vpop.eup %124 }
  0x14   :  { %v29_v12 = vadd.f32 1.0, %v125_v11 }
  0x16   :  { %v30_v13 = vmul.f32 %v29_v12, %v22_v10 }
  0x18   :  { %119 = vmatmul.msk.f32.vlgmr.msra.gmra.mxu0 %vm39_vm0, %v30_v13 }
  0x95   :  { %v60_v17 = vpop.f32.mrf.mxu0 }
  0x96   :  { %v61_v18 = vadd.f32 %v122_v16, %v60_v17 }
  0x98   :  { %v64_v19 = vmul.f32 0.044715, %v61_v18  ;;  %v63_v25 = vmul.f32 0.5, %v61_v18 }
  0x9a   :  { %v65_v20 = vmul.f32 %v64_v19, %v61_v18 }
  0x9c   :  { %v66_v21 = vmul.f32 %v65_v20, %v61_v18 }
  0x9e   :  { %v67_v22 = vadd.f32 %v66_v21, %v61_v18 }
  0xa0   :  { %v68_v23 = vmul.f32 0.7978846, %v67_v22 }
  0xa2   :  { %126 = vtanh.f32 %v68_v23 }
  0xa8   :  { %v127_v24 = vpop.eup %126 }
  0xa9   :  { %v70_v26 = vadd.f32 1.0, %v127_v24 }
  0xab   :  { %v71_v27 = vmul.f32 %v70_v26, %v63_v25 }
  0xad   :  { %120 = vmatmul.msk.f32.vlgmr.msra.gmra.mxu1 %vm78_vm1, %v71_v27 }
 0x12a   :  { %v99_v29 = vpop.f32.mrf.mxu1 }
 0x12b   :  { %v100_v30 = vadd.f32 %v123_v28, %v99_v29 }
 0x12d   :  { %102 = vst [vmem:[#allocation2] sm:$0xff] %v100_v30 }
 0x12e   :  { %113 = dma.vmem_to_hbm [thread:$0]  %s109_s2, 128, %s111_s11, [#allocation3]  }
 0x12f   :  { %152 = dma.done.wait [#allocation3], 128  }
 0x130   :  { %153 = vsyncadd [#allocation3], 4294967168 }
 0x131   :  { %118 = vsyncpa [#allocation3], 1 }

</bundles_post_ra>
